<compile_context>
chip_gen: v5e
topology: v5e:2x2
jax: 0.10.0
libtpu: 0.0.40
codegen_flags: <defaults>
</compile_context>

<pallas_src>
import functools

import jax
import jax.numpy as jnp
from jax import lax
from jax.experimental import pallas as pl
from jax.experimental.pallas import tpu as pltpu

# minigrid constants: OBJECT_TO_IDX max = 10, COLOR_TO_IDX max = 5
NUM_OBJECTS = 11
NUM_COLORS = 6

OUT_W = 128  # lane-dense padded output width: [logits (A) | value (1) | zeros]


# ----------------------------------------------------------------------------
# Pallas kernel: backbone + fused actor/critic heads + masked log_softmax
# ----------------------------------------------------------------------------
def _fused_ac_kernel(x_ref, w1_ref, ws_ref, bs_ref, out_ref, *, hidden, num_actions):
    f32 = jnp.float32
    bf16 = jnp.bfloat16

    # backbone: ReLU -> Linear(D_in->H) -> ReLU -> Linear(H->H) -> ReLU
    x = jnp.maximum(x_ref[...], 0.0)                                     # (TB, D_in) f32
    b1 = bs_ref[0:1, 0:hidden]                                           # (1, H) f32
    h = jnp.dot(x.astype(bf16), w1_ref[...], preferred_element_type=f32) + b1
    h = jnp.maximum(h, 0.0)

    w2 = ws_ref[0:hidden, 0:hidden]                                      # (H, H) bf16
    b2 = bs_ref[1:2, 0:hidden]
    h = jnp.dot(h.astype(bf16), w2, preferred_element_type=f32) + b2
    h = jnp.maximum(h, 0.0)

    # fused heads, layer 1: [actor | critic] -> tanh
    h1w = ws_ref[hidden:2 * hidden, 0:2 * hidden]                        # (H, 2H) bf16
    hb1 = bs_ref[2:3, 0:2 * hidden]
    t = jnp.tanh(jnp.dot(h.astype(bf16), h1w, preferred_element_type=f32) + hb1)

    # fused heads, layer 2: block-diagonal [[aw2, 0], [0, cw2]] padded to 128 lanes
    h2w = ws_ref[2 * hidden:4 * hidden, :]                               # (2H, 128) bf16
    hb2 = bs_ref[3:4, :]                                                 # (1, 128) f32
    z = jnp.dot(t.astype(bf16), h2w, preferred_element_type=f32) + hb2   # (TB, 128)

    # lanes 0..A-1 = actor logits, lane A = critic value, rest = padding
    lane = lax.broadcasted_iota(jnp.int32, z.shape, 1)
    is_action = lane < num_actions
    masked = jnp.where(is_action, z, -1e30)
    m = jnp.max(masked, axis=-1, keepdims=True)
    e = jnp.where(is_action, jnp.exp(masked - m), 0.0)
    lse = jnp.log(jnp.sum(e, axis=-1, keepdims=True))
    logp = masked - m - lse
    out = jnp.where(is_action, logp, jnp.where(lane == num_actions, z, 0.0))
    out_ref[...] = out


# ----------------------------------------------------------------------------
# Parameter packing: 3 weight/bias slabs -> 4 input DMAs total
# ----------------------------------------------------------------------------
def _pack_mlp_params(mlp, hidden, num_actions):
    assert 2 * hidden <= OUT_W and num_actions + 1 <= OUT_W
    # W1 stays its own (D_in, H) slab (the big one), stored bf16.
    w1 = mlp["w1"].astype(jnp.bfloat16)

    # small weights slab: (4H, 128) bf16
    ws = jnp.zeros((4 * hidden, OUT_W), jnp.float32)
    ws = ws.at[0:hidden, 0:hidden].set(mlp["w2"])
    ws = ws.at[hidden:2 * hidden, 0:hidden].set(mlp["aw1"])
    ws = ws.at[hidden:2 * hidden, hidden:2 * hidden].set(mlp["cw1"])
    ws = ws.at[2 * hidden:3 * hidden, 0:num_actions].set(mlp["aw2"])
    ws = ws.at[3 * hidden:4 * hidden, num_actions:num_actions + 1].set(mlp["cw2"])
    ws = ws.astype(jnp.bfloat16)

    # bias slab: (8, 128) f32 (rows 0..3 used; padded to 8 sublanes)
    bs = jnp.zeros((8, OUT_W), jnp.float32)
    bs = bs.at[0, 0:hidden].set(mlp["b1"].reshape(-1))
    bs = bs.at[1, 0:hidden].set(mlp["b2"].reshape(-1))
    bs = bs.at[2, 0:hidden].set(mlp["ab1"].reshape(-1))
    bs = bs.at[2, hidden:2 * hidden].set(mlp["cb1"].reshape(-1))
    bs = bs.at[3, 0:num_actions].set(mlp["ab2"].reshape(-1))
    bs = bs.at[3, num_actions].set(mlp["cb2"].reshape(()))
    return w1, ws, bs


def _ac_mlp_pallas(x, mlp, hidden, num_actions):
    B, d_in = x.shape
    w1, ws, bs = _pack_mlp_params(mlp, hidden, num_actions)

    # batch tile: multiple of 8, capped at 512 (keeps double-buffered x tiles
    # tiny relative to v7x's 64 MiB VMEM; plenty for v5e/v6e too)
    TB = min(512, max(8, ((B + 7) // 8) * 8))
    Bp = ((B + TB - 1) // TB) * TB
    if Bp != B:
        x = jnp.pad(x, ((0, Bp - B), (0, 0)))

    kernel = functools.partial(_fused_ac_kernel, hidden=hidden, num_actions=num_actions)
    out = pl.pallas_call(
        kernel,
        out_shape=jax.ShapeDtypeStruct((Bp, OUT_W), jnp.float32),
        grid_spec=pltpu.PrefetchScalarGridSpec(
            num_scalar_prefetch=0,
            grid=(Bp // TB,),
            in_specs=[
                pl.BlockSpec((TB, d_in), lambda i: (i, 0)),           # x tile
                pl.BlockSpec((d_in, hidden), lambda i: (0, 0)),       # W1 (resident)
                pl.BlockSpec((4 * hidden, OUT_W), lambda i: (0, 0)),  # weight slab
                pl.BlockSpec((8, OUT_W), lambda i: (0, 0)),           # bias slab
            ],
            out_specs=pl.BlockSpec((TB, OUT_W), lambda i: (i, 0)),
        ),
        compiler_params=pltpu.CompilerParams(
            dimension_semantics=("parallel",),
            vmem_limit_bytes=64 * 1024 * 1024,
        ),
    )(x, w1, ws, bs)

    logits = out[:B, :num_actions]
    value = out[:B, num_actions]
    return logits, value


# ----------------------------------------------------------------------------
# Encoder glue (embedding gathers, no transpose) + full forward
# ----------------------------------------------------------------------------
def encoder_forward(image, observed_color, enc, h, w, emb_ch):
    B = image.shape[0]
    obj_idx = image[..., 0]                                        # (B, H, W)
    col_idx = image[..., 1]                                        # (B, H, W)
    obj_e = jnp.take(enc["obj_emb"], obj_idx, axis=0)              # (B, H, W, E)
    col_e = jnp.take(enc["col_emb"], col_idx, axis=0)              # (B, H, W, E)
    oc_e = jnp.take(enc["obs_col_emb"], observed_color, axis=0)    # (B, E)
    xim = (obj_e + col_e).reshape(B, h * w, emb_ch) + oc_e[:, None, :]
    return xim.reshape(B, h * w * emb_ch).astype(jnp.float32)


def follower_explorer_forward(image, observed_color, model_params, h, w,
                              emb_ch, hidden, num_actions):
    # ImpossiblyGoodFollowerExplorerModel.forward == self.explorer(obs)
    explorer = model_params["explorer"]
    x = encoder_forward(image, observed_color, explorer["encoder"], h, w, emb_ch)
    logits, value = _ac_mlp_pallas(x, explorer["mlp"], hidden, num_actions)
    # Categorical(logits=log_softmax(...)) represented by its log-prob logits;
    # critic Flatten(0, -1) -> (B,)
    return logits, value


# ----------------------------------------------------------------------------
# Deterministic parameter init (matches torch module, embedding/hidden = 16)
# ----------------------------------------------------------------------------
def init_ac_model_params(key, h, w, emb_ch, hidden, num_actions):
    d_in = h * w * emb_ch
    keys = jax.random.split(key, 16)

    def lin(k, fin, fout):
        kw, kb = jax.random.split(k)
        scale = 1.0 / jnp.sqrt(jnp.float32(fin))
        W = jax.random.uniform(kw, (fin, fout), jnp.float32, -scale, scale)
        b = jax.random.uniform(kb, (1, fout), jnp.float32, -scale, scale)
        return W, b

    enc = {
        "obj_emb": jax.random.normal(keys[0], (NUM_OBJECTS, emb_ch), jnp.float32),
        "col_emb": jax.random.normal(keys[1], (NUM_COLORS, emb_ch), jnp.float32),
        "obs_col_emb": jax.random.normal(keys[2], (NUM_COLORS, emb_ch), jnp.float32),
    }
    w1, b1 = lin(keys[3], d_in, hidden)
    w2, b2 = lin(keys[4], hidden, hidden)
    aw1, ab1 = lin(keys[5], hidden, hidden)
    aw2, ab2 = lin(keys[6], hidden, num_actions)
    cw1, cb1 = lin(keys[7], hidden, hidden)
    cw2, cb2 = lin(keys[8], hidden, 1)
    mlp = dict(w1=w1, b1=b1, w2=w2, b2=b2,
               aw1=aw1, ab1=ab1, aw2=aw2, ab2=ab2,
               cw1=cw1, cb1=cb1, cw2=cw2, cb2=cb2)
    return {"encoder": enc, "mlp": mlp}


def init_follower_explorer_params(key, h, w, emb_ch, hidden, num_actions):
    kf, ke = jax.random.split(key)
    return {
        "follower": init_ac_model_params(kf, h, w, emb_ch, hidden, num_actions),
        "explorer": init_ac_model_params(ke, h, w, emb_ch, hidden, num_actions),
    }


# ----------------------------------------------------------------------------
# Pure-JAX reference (same bf16 dot / f32 accumulate discipline) for validation
# ----------------------------------------------------------------------------
def _ref_mlp(x, mlp, num_actions):
    bf = jnp.bfloat16
    f32 = jnp.float32
    h = jnp.maximum(x, 0.0)
    h = jnp.dot(h.astype(bf), mlp["w1"].astype(bf), preferred_element_type=f32) + mlp["b1"]
    h = jnp.maximum(h, 0.0)
    h = jnp.dot(h.astype(bf), mlp["w2"].astype(bf), preferred_element_type=f32) + mlp["b2"]
    h = jnp.maximum(h, 0.0)
    a = jnp.tanh(jnp.dot(h.astype(bf), mlp["aw1"].astype(bf), preferred_element_type=f32) + mlp["ab1"])
    logits = jnp.dot(a.astype(bf), mlp["aw2"].astype(bf), preferred_element_type=f32) + mlp["ab2"]
    logp = jax.nn.log_softmax(logits, axis=-1)
    c = jnp.tanh(jnp.dot(h.astype(bf), mlp["cw1"].astype(bf), preferred_element_type=f32) + mlp["cb1"])
    v = jnp.dot(c.astype(bf), mlp["cw2"].astype(bf), preferred_element_type=f32) + mlp["cb2"]
    return logp, v.reshape(-1)


# ----------------------------------------------------------------------------
if __name__ == "__main__":
    B, H, W = 2, 5, 5
    EMB_CH = 16
    HIDDEN = 16
    NUM_ACTIONS = 7

    key = jax.random.PRNGKey(0)
    k_img, k_col, k_state, k_oc, k_params = jax.random.split(key, 5)

    obj_plane = jax.random.randint(k_img, (B, H, W, 1), 0, NUM_OBJECTS, jnp.int32)
    col_plane = jax.random.randint(k_col, (B, H, W, 1), 0, NUM_COLORS, jnp.int32)
    state_plane = jax.random.randint(k_state, (B, H, W, 1), 0, 3, jnp.int32)
    image = jnp.concatenate([obj_plane, col_plane, state_plane], axis=-1)  # (B,H,W,3)
    observed_color = jax.random.randint(k_oc, (B,), 0, NUM_COLORS, jnp.int32)

    params = init_follower_explorer_params(
        k_params, H, W, EMB_CH, HIDDEN, NUM_ACTIONS)

    logits, value = follower_explorer_forward(
        image, observed_color, params, H, W, EMB_CH, HIDDEN, NUM_ACTIONS)
    jax.block_until_ready((logits, value))

    assert logits.shape == (B, NUM_ACTIONS)
    assert value.shape == (B,)
    # log_softmax rows should exp-sum to ~1
    assert bool(jnp.allclose(jnp.exp(logits).sum(-1), 1.0, atol=1e-4))

    # reference check against plain-JAX forward with matching bf16 dots
    x_ref = encoder_forward(image, observed_color, params["explorer"]["encoder"],
                            H, W, EMB_CH)
    ref_logits, ref_value = _ref_mlp(x_ref, params["explorer"]["mlp"], NUM_ACTIONS)
    assert bool(jnp.allclose(logits, ref_logits, atol=2e-2, rtol=2e-2))
    assert bool(jnp.allclose(value, ref_value, atol=2e-2, rtol=2e-2))

    print("KERNEL_OK")
</pallas_src>

<mosaic_0001>
module attributes {stable_mosaic.version = 11 : i64} {
  func.func @_fused_ac_kernel(%arg0: i32, %arg1: memref<8x400xf32, #tpu.memory_space<vmem>>, %arg2: memref<400x16xbf16, #tpu.memory_space<vmem>>, %arg3: memref<64x128xbf16, #tpu.memory_space<vmem>>, %arg4: memref<8x128xf32, #tpu.memory_space<vmem>>, %arg5: memref<8x128xf32, #tpu.memory_space<vmem>>) attributes {dimension_semantics = [#tpu.dimension_semantics<parallel>], iteration_bounds = array<i64: 1>, scalar_prefetch = 0 : i64, scratch_operands = 0 : i64, tpu.core_type = #tpu.core_type<tc>, window_params = [{transform_indices = @transform_0, window_bounds = array<i64: 8, 400>}, {pipeline_mode = #tpu.pipeline_mode<synchronous>, transform_indices = @transform_1, window_bounds = array<i64: 400, 16>}, {pipeline_mode = #tpu.pipeline_mode<synchronous>, transform_indices = @transform_2, window_bounds = array<i64: 64, 128>}, {pipeline_mode = #tpu.pipeline_mode<synchronous>, transform_indices = @transform_3, window_bounds = array<i64: 8, 128>}, {transform_indices = @transform_4, window_bounds = array<i64: 8, 128>}]} {
    %c0 = arith.constant 0 : index
    %c0_0 = arith.constant 0 : index
    %0 = vector.load %arg1[%c0, %c0_0] : memref<8x400xf32, #tpu.memory_space<vmem>>, vector<8x400xf32>
    %cst = arith.constant 0.000000e+00 : f32
    %1 = vector.broadcast %cst : f32 to vector<8x400xf32>
    %2 = arith.maximumf %0, %1 : vector<8x400xf32>
    %c0_1 = arith.constant 0 : index
    %c0_2 = arith.constant 0 : index
    %3 = vector.load %arg4[%c0_1, %c0_2] : memref<8x128xf32, #tpu.memory_space<vmem>>, vector<1x16xf32>
    %4 = arith.truncf %2 : vector<8x400xf32> to vector<8x400xbf16>
    %c0_3 = arith.constant 0 : index
    %c0_4 = arith.constant 0 : index
    %5 = vector.load %arg2[%c0_3, %c0_4] : memref<400x16xbf16, #tpu.memory_space<vmem>>, vector<400x16xbf16>
    %cst_5 = arith.constant dense<0.000000e+00> : vector<8x16xf32>
    %6 = tpu.matmul %4, %5, %cst_5 {dimension_numbers = #tpu.dot_dimension_numbers<[1], [0], [0], [1], [0, 0, 1, 1], [], []>} : vector<8x400xbf16>, vector<400x16xbf16>, vector<8x16xf32> -> vector<8x16xf32>
    %7 = vector.broadcast %3 : vector<1x16xf32> to vector<8x16xf32>
    %8 = arith.addf %6, %7 : vector<8x16xf32>
    %cst_6 = arith.constant 0.000000e+00 : f32
    %9 = vector.broadcast %cst_6 : f32 to vector<8x16xf32>
    %10 = arith.maximumf %8, %9 : vector<8x16xf32>
    %c0_7 = arith.constant 0 : index
    %c0_8 = arith.constant 0 : index
    %11 = vector.load %arg3[%c0_7, %c0_8] : memref<64x128xbf16, #tpu.memory_space<vmem>>, vector<16x16xbf16>
    %c1 = arith.constant 1 : index
    %c0_9 = arith.constant 0 : index
    %12 = vector.load %arg4[%c1, %c0_9] : memref<8x128xf32, #tpu.memory_space<vmem>>, vector<1x16xf32>
    %13 = arith.truncf %10 : vector<8x16xf32> to vector<8x16xbf16>
    %cst_10 = arith.constant dense<0.000000e+00> : vector<8x16xf32>
    %14 = tpu.matmul %13, %11, %cst_10 {dimension_numbers = #tpu.dot_dimension_numbers<[1], [0], [0], [1], [0, 0, 1, 1], [], []>} : vector<8x16xbf16>, vector<16x16xbf16>, vector<8x16xf32> -> vector<8x16xf32>
    %15 = vector.broadcast %12 : vector<1x16xf32> to vector<8x16xf32>
    %16 = arith.addf %14, %15 : vector<8x16xf32>
    %cst_11 = arith.constant 0.000000e+00 : f32
    %17 = vector.broadcast %cst_11 : f32 to vector<8x16xf32>
    %18 = arith.maximumf %16, %17 : vector<8x16xf32>
    %c16 = arith.constant 16 : index
    %c0_12 = arith.constant 0 : index
    %19 = vector.load %arg3[%c16, %c0_12] : memref<64x128xbf16, #tpu.memory_space<vmem>>, vector<16x32xbf16>
    %c2 = arith.constant 2 : index
    %c0_13 = arith.constant 0 : index
    %20 = vector.load %arg4[%c2, %c0_13] : memref<8x128xf32, #tpu.memory_space<vmem>>, vector<1x32xf32>
    %21 = arith.truncf %18 : vector<8x16xf32> to vector<8x16xbf16>
    %cst_14 = arith.constant dense<0.000000e+00> : vector<8x32xf32>
    %22 = tpu.matmul %21, %19, %cst_14 {dimension_numbers = #tpu.dot_dimension_numbers<[1], [0], [0], [1], [0, 0, 1, 1], [], []>} : vector<8x16xbf16>, vector<16x32xbf16>, vector<8x32xf32> -> vector<8x32xf32>
    %23 = vector.broadcast %20 : vector<1x32xf32> to vector<8x32xf32>
    %24 = arith.addf %22, %23 : vector<8x32xf32>
    %25 = math.tanh %24 : vector<8x32xf32>
    %c32 = arith.constant 32 : index
    %c0_15 = arith.constant 0 : index
    %26 = vector.load %arg3[%c32, %c0_15] : memref<64x128xbf16, #tpu.memory_space<vmem>>, vector<32x128xbf16>
    %c3 = arith.constant 3 : index
    %c0_16 = arith.constant 0 : index
    %27 = vector.load %arg4[%c3, %c0_16] : memref<8x128xf32, #tpu.memory_space<vmem>>, vector<1x128xf32>
    %28 = arith.truncf %25 : vector<8x32xf32> to vector<8x32xbf16>
    %cst_17 = arith.constant dense<0.000000e+00> : vector<8x128xf32>
    %29 = tpu.matmul %28, %26, %cst_17 {dimension_numbers = #tpu.dot_dimension_numbers<[1], [0], [0], [1], [0, 0, 1, 1], [], []>} : vector<8x32xbf16>, vector<32x128xbf16>, vector<8x128xf32> -> vector<8x128xf32>
    %30 = vector.broadcast %27 : vector<1x128xf32> to vector<8x128xf32>
    %31 = arith.addf %29, %30 : vector<8x128xf32>
    %32 = tpu.iota {dimensions = array<i32: 1>} : vector<8x128xi32>
    %c7_i32 = arith.constant 7 : i32
    %33 = vector.broadcast %c7_i32 : i32 to vector<8x128xi32>
    %34 = arith.cmpi slt, %32, %33 : vector<8x128xi32>
    %cst_18 = arith.constant -1.000000e+30 : f32
    %35 = vector.broadcast %cst_18 : f32 to vector<8x128xf32>
    %36 = arith.select %34, %31, %35 : vector<8x128xi1>, vector<8x128xf32>
    %cst_19 = arith.constant dense<0xFF800000> : vector<8xf32>
    %37 = vector.multi_reduction <maximumf>, %36, %cst_19 [1] : vector<8x128xf32> to vector<8xf32>
    %38 = vector.shape_cast %37 : vector<8xf32> to vector<8x1xf32>
    %39 = vector.broadcast %38 : vector<8x1xf32> to vector<8x128xf32>
    %40 = arith.subf %36, %39 : vector<8x128xf32>
    %41 = math.exp %40 : vector<8x128xf32>
    %cst_20 = arith.constant 0.000000e+00 : f32
    %42 = vector.broadcast %cst_20 : f32 to vector<8x128xf32>
    %43 = arith.select %34, %41, %42 : vector<8x128xi1>, vector<8x128xf32>
    %cst_21 = arith.constant dense<0.000000e+00> : vector<8xf32>
    %44 = vector.multi_reduction <add>, %43, %cst_21 [1] : vector<8x128xf32> to vector<8xf32>
    %45 = vector.shape_cast %44 : vector<8xf32> to vector<8x1xf32>
    %46 = math.log %45 : vector<8x1xf32>
    %47 = vector.broadcast %38 : vector<8x1xf32> to vector<8x128xf32>
    %48 = arith.subf %36, %47 : vector<8x128xf32>
    %49 = vector.broadcast %46 : vector<8x1xf32> to vector<8x128xf32>
    %50 = arith.subf %48, %49 : vector<8x128xf32>
    %c7_i32_22 = arith.constant 7 : i32
    %51 = vector.broadcast %c7_i32_22 : i32 to vector<8x128xi32>
    %52 = arith.cmpi eq, %32, %51 : vector<8x128xi32>
    %cst_23 = arith.constant 0.000000e+00 : f32
    %53 = vector.broadcast %cst_23 : f32 to vector<8x128xf32>
    %54 = arith.select %52, %31, %53 : vector<8x128xi1>, vector<8x128xf32>
    %55 = arith.select %34, %50, %54 : vector<8x128xi1>, vector<8x128xf32>
    %c0_24 = arith.constant 0 : index
    %c0_25 = arith.constant 0 : index
    %56 = vector.load %arg5[%c0_24, %c0_25] : memref<8x128xf32, #tpu.memory_space<vmem>>, vector<8x128xf32>
    tpu.vector_store %arg5[%c0_24, %c0_25], %55 {strides = array<i32>} : memref<8x128xf32, #tpu.memory_space<vmem>>, vector<8x128xf32>,
    return
  }
  func.func @transform_0(%arg0: i32) -> (i32, i32) {
    %c0_i32 = arith.constant 0 : i32
    %c0_i32_0 = arith.constant 0 : i32
    return %arg0, %c0_i32 : i32, i32
  }
  func.func @transform_1(%arg0: i32) -> (i32, i32) {
    %c0_i32 = arith.constant 0 : i32
    %c0_i32_0 = arith.constant 0 : i32
    %c0_i32_1 = arith.constant 0 : i32
    return %c0_i32, %c0_i32_0 : i32, i32
  }
  func.func @transform_2(%arg0: i32) -> (i32, i32) {
    %c0_i32 = arith.constant 0 : i32
    %c0_i32_0 = arith.constant 0 : i32
    %c0_i32_1 = arith.constant 0 : i32
    return %c0_i32, %c0_i32_0 : i32, i32
  }
  func.func @transform_3(%arg0: i32) -> (i32, i32) {
    %c0_i32 = arith.constant 0 : i32
    %c0_i32_0 = arith.constant 0 : i32
    %c0_i32_1 = arith.constant 0 : i32
    return %c0_i32, %c0_i32_0 : i32, i32
  }
  func.func @transform_4(%arg0: i32) -> (i32, i32) {
    %c0_i32 = arith.constant 0 : i32
    %c0_i32_0 = arith.constant 0 : i32
    return %arg0, %c0_i32 : i32, i32
  }
}

</mosaic_0001>

<bundles_post_ra>
// kernel: tpu_custom_call.1
= control target key start
LH: loop header
LB: loop body
LE: loop exit
PB: predicated region body
PF: predicated region fallthrough
CT: control target
= control target key end

     0   :  { %vm233_vm0 = vcmask 130048   ;;  %s749_s0 = inlined_call_operand.vmem [shape: f32[8,400], index: 0, kind: input, shape index: {}]   ;;  %s750_s1 = inlined_call_operand.vmem [shape: bf16[400,16], index: 1, kind: input, shape index: {}]   ;;  %s751_s2 = inlined_call_operand.vmem [shape: bf16[64,128], index: 2, kind: input, shape index: {}]   ;;  %s752_s3 = inlined_call_operand.vmem [shape: f32[8,128], index: 3, kind: input, shape index: {}]   ;;  %s753_s4 = inlined_call_operand.hbm [shape: f32[8,128], index: 4, kind: output, shape index: {}]  }
   0x1   :  { %v544_v0 = vld [vmem:[%s750_s1 + $0x38] sm:$0xff]  ;;  %v543_v3 = vld [vmem:[%s750_s1 + $0x30] sm:$0xff]  ;;  %v542_v6 = vld [vmem:[%s750_s1 + $0x28] sm:$0xff] }
   0x2   :  { %v552_v1 = vld [vmem:[%s750_s1 + $0x78] sm:$0xff]  ;;  %237 = vmatpush.bf16.msra.mxu0 %v544_v0  ;;  %v551_v4 = vld [vmem:[%s750_s1 + $0x70] sm:$0xff]  ;;  %v550_v7 = vld [vmem:[%s750_s1 + $0x68] sm:$0xff] }
   0x3   :  { %v560_v2 = vld [vmem:[%s750_s1 + $0xb8] sm:$0xff]  ;;  %250 = vmatpush.bf16.msra.mxu1 %v552_v1  ;;  %v559_v5 = vld [vmem:[%s750_s1 + $0xb0] sm:$0xff]  ;;  %v561_v8 = vld [vmem:[%s750_s1 + $0xc0] sm:$0xff] }
   0x4   :  { %263 = vmatpush.bf16.msra.mxu2 %v560_v2  ;;  %v558_v9 = vld [vmem:[%s750_s1 + $0xa8] sm:$0xff]  ;;  %v22_v10 = vld [vmem:[%s749_s0 + $0x18] sm:$0xff]  ;;  %283 = vmatpush.bf16.msra.mxu3 %v561_v8  ;;  %v541_v12 = vld [vmem:[%s750_s1 + $0x20] sm:$0xff] }
   0x5   :  { %v26_v11 = vmax.f32 %v22_v10, 0.0  ;;  %v562_v13 = vld [vmem:[%s751_s2] sm:$0xff] }
   0x6   :  { %238 = vmatpush.bf16.msra.mxu0 %v543_v3  ;;  %v549_v14 = vld [vmem:[%s750_s1 + $0x60] sm:$0xff] }
   0x7   :  { %251 = vmatpush.bf16.msra.mxu1 %v551_v4  ;;  %v557_v15 = vld [vmem:[%s750_s1 + $0xa0] sm:$0xff]  ;;  %v31_v16 = vpack.c.bf16 %v26_v11, %v26_v11 }
   0x8   :  { %264 = vmatpush.bf16.msra.mxu2 %v559_v5  ;;  %311 = vmatpush.bf16.msrb.mxu3 %v562_v13 }
   0x9   :  { %517 = vmatmul.msk.bf16.vlgmr.msra.gmra.mxu3 %vm233_vm0, %v31_v16 }
   0xa   :  { %239 = vmatpush.bf16.msra.mxu0 %v542_v6 }
   0xb   :  { %252 = vmatpush.bf16.msra.mxu1 %v550_v7 }
   0xc   :  { %265 = vmatpush.bf16.msra.mxu2 %v558_v9 }
   0xd   :  { %9 = vsyncpa [#allocation3], 0  ;;  %v540_v17 = vld [vmem:[%s750_s1 + $0x18] sm:$0xff]  ;;  %v539_v20 = vld [vmem:[%s750_s1 + $0x10] sm:$0xff]  ;;  %vm365_vm1 = vcmask 261120   ;;  %v382_v4 = vlaneseq  ;;  %s408_s11 = sshll.u32 %s753_s4, 4  ;;  %s409_s11 = int_to_ptr.hbm [resolvable:$true] %s408_s11 }
   0xe   :  { %240 = vmatpush.bf16.msra.mxu0 %v541_v12  ;;  %v548_v18 = vld [vmem:[%s750_s1 + $0x58] sm:$0xff]  ;;  %v547_v21 = vld [vmem:[%s750_s1 + $0x50] sm:$0xff]  ;;  %v538_v23 = vld [vmem:[%s750_s1 + $0x8] sm:$0xff] }
   0xf   :  { %253 = vmatpush.bf16.msra.mxu1 %v549_v14  ;;  %v556_v19 = vld [vmem:[%s750_s1 + $0x98] sm:$0xff]  ;;  %v555_v22 = vld [vmem:[%s750_s1 + $0x90] sm:$0xff]  ;;  %v546_v24 = vld [vmem:[%s750_s1 + $0x48] sm:$0xff]  ;;  %v383_v5 = vand.u32 127, %v382_v4 }
  0x10   :  { %266 = vmatpush.bf16.msra.mxu2 %v557_v15  ;;  %v19_v25 = vld [vmem:[%s749_s0] sm:$0xff]  ;;  %v20_v26 = vld [vmem:[%s749_s0 + $0x8] sm:$0xff]  ;;  %v21_v28 = vld [vmem:[%s749_s0 + $0x10] sm:$0xff] }
  0x11   :  { %v554_v27 = vld [vmem:[%s750_s1 + $0x88] sm:$0xff]  ;;  %v23_v29 = vmax.f32 %v19_v25, 0.0  ;;  %v24_v30 = vmax.f32 %v20_v26, 0.0  ;;  %v537_v31 = vld [vmem:[%s750_s1] sm:$0xff]  ;;  %v25_v33 = vmax.f32 %v21_v28, 0.0  ;;  %v565_v54 = vld [vmem:[%s751_s2 + $0x18] sm:$0xff] }
  0x12   :  { %241 = vmatpush.bf16.msra.mxu0 %v540_v17  ;;  %v545_v32 = vld [vmem:[%s750_s1 + $0x40] sm:$0xff]  ;;  %v563_v38 = vld [vmem:[%s751_s2 + $0x8] sm:$0xff]  ;;  %v564_v61 = vld [vmem:[%s751_s2 + $0x10] sm:$0xff]  ;;  %vm397_vm2 = vcmp.eq.s32.totalorder %v383_v5, 7  ;;  %vm384_vm3 = vcmp.lt.s32.totalorder %v383_v5, 7  ;;  %s603_s2 = smov [#allocation2]  }
  0x13   :  { %254 = vmatpush.bf16.msra.mxu1 %v548_v18  ;;  %v553_v34 = vld [vmem:[%s750_s1 + $0x80] sm:$0xff]  ;;  %v28_v35 = vpack.c.bf16 %v23_v29, %v23_v29  ;;  %v29_v36 = vpack.c.bf16 %v24_v30, %v24_v30  ;;  %v30_v37 = vpack.c.bf16 %v25_v33, %v25_v33  ;;  %339 = vmatpush.bf16.msra.mxu3 %v563_v38 }
  0x14   :  { %267 = vmatpush.bf16.msra.mxu2 %v556_v19  ;;  %v567_v41 = vld [vmem:[%s752_s3] ss:$0 sm:$0xff]  ;;  %v568_v55 = vld [vmem:[%s752_s3 + $0x1] ss:$0 sm:$0xff]  ;;  %v569_v62 = vld [vmem:[%s752_s3 + $0x2] ss:$0 sm:$0xff] }
  0x15   :  { %v570_v6 = vld [vmem:[%s752_s3 + $0x3] ss:$0 sm:$0xff]  ;;  %s406_s3 = sshll.u32 %s603_s2, 4  ;;  %s407_s3 = int_to_ptr.vmem [resolvable:$true] %s406_s3 }
  0x16   :  { %242 = vmatpush.bf16.msra.mxu0 %v539_v20 }
  0x17   :  { %255 = vmatpush.bf16.msra.mxu1 %v547_v21 }
  0x18   :  { %268 = vmatpush.bf16.msra.mxu2 %v555_v22 }
  0x1a   :  { %243 = vmatpush.bf16.msra.mxu0 %v538_v23 }
  0x1b   :  { %256 = vmatpush.bf16.msra.mxu1 %v546_v24 }
  0x1c   :  { %269 = vmatpush.bf16.msra.mxu2 %v554_v27 }
  0x1e   :  { %244 = vmatpush.bf16.msra.mxu0 %v537_v31 }
  0x1f   :  { %257 = vmatpush.bf16.msra.mxu1 %v545_v32 }
  0x20   :  { %270 = vmatpush.bf16.msra.mxu2 %v553_v34 }
  0x21   :  { %245 = vmatmul.bf16.vlgmr.msra.gmra.mxu0 %v28_v35 }
  0x22   :  { %258 = vmatmul.bf16.vlgmr.msra.gmra.mxu1 %v29_v36  ;;  %375 = vmatpush.bf16.msrb.mxu0 %v565_v54 }
  0x23   :  { %271 = vmatmul.bf16.vlgmr.msra.gmra.mxu2 %v30_v37 }
  0x26   :  { %376 = vmatpush.bf16.msrb.mxu0 %v564_v61 }
  0x8c   :  { %v285_v39 = vpop.f32.mrf.mxu3 }
  0x94   :  { %v287_v40 = vpop.f32.mrf.mxu3 }
  0x9e   :  { %v246_v42 = vpop.f32.mrf.mxu0 }
  0x9f   :  { %v259_v43 = vpop.f32.mrf.mxu1  ;;  %v247_v44 = vadd.f32 %v567_v41, %v246_v42 }
  0xa1   :  { %v260_v45 = vadd.f32 %v259_v43, %v247_v44 }
  0xa6   :  { %v272_v46 = vpop.f32.mrf.mxu2  ;;  %v248_v48 = vpop.f32.mrf.mxu0 }
  0xa7   :  { %v273_v47 = vadd.f32 %v272_v46, %v260_v45  ;;  %v261_v49 = vpop.f32.mrf.mxu1 }
  0xa9   :  { %v286_v50 = vadd.f32 %v285_v39, %v273_v47 }
  0xab   :  { %v289_v51 = vmax.f32 %v286_v50, 0.0 }
  0xad   :  { %v293_v52 = vpack.c.bf16 %v289_v51, %v289_v51 }
  0xae   :  { %v274_v53 = vpop.f32.mrf.mxu2 }
  0xaf   :  { %522 = vmatmul.msk.bf16.vlgmr.msrb.gmra.mxu3 %vm233_vm0, %v293_v52 }
 0x132   :  { %v313_v56 = vpop.f32.mrf.mxu3 }
 0x133   :  { %v314_v57 = vadd.f32 %v568_v55, %v313_v56 }
 0x135   :  { %v317_v58 = vmax.f32 %v314_v57, 0.0 }
 0x137   :  { %v321_v59 = vpack.c.bf16 %v317_v58, %v317_v58 }
 0x139   :  { %527 = vmatmul.msk.bf16.vlgmr.msra.gmra.mxu3 %vm233_vm0, %v321_v59 }
 0x13a   :  { %v315_v60 = vpop.f32.mrf.mxu3 }
 0x1bc   :  { %v341_v63 = vpop.f32.mrf.mxu3 }
 0x1bd   :  { %v342_v0 = vadd.f32 %v569_v62, %v341_v63 }
 0x1bf   :  { %571 = vtanh.f32 %v342_v0 }
 0x1c4   :  { %v343_v1 = vpop.f32.mrf.mxu3 }
 0x1c5   :  { %v572_v2 = vpop.eup %571 }
 0x1c6   :  { %v351_v3 = vpack.c.bf16 %v572_v2, %v572_v2 }
 0x1c8   :  { %536 = vmatmul.msk.bf16.vlgmr.msrb.gmra.mxu0 %vm365_vm1, %v351_v3 }
 0x245   :  { %v378_v7 = vpop.f32.mrf.mxu0 }
 0x246   :  { %v379_v8 = vadd.f32 %v570_v6, %v378_v7 }
 0x248   :  { %v398_v9 = vsel %vm397_vm2, %v379_v8, 0.0  ;;  %v385_v10 = vsel %vm384_vm3, %v379_v8, -1e+30 }
 0x249   :  { %386 = vmax.xlane.f32.xlu0 %v385_v10 }
 0x24d   :  { %v380_v11 = vpop.f32.mrf.mxu0 }
 0x2bc   :  { %v387_v12 = vpop.xlane.xlu0 %386 }
 0x2bd   :  { %v388_v13 = vsub.f32 %v385_v10, %v387_v12 }
 0x2bf   :  { %v389_v14 = vmul.f32 1.442695, %v388_v13 }
 0x2c1   :  { %573 = vpow2.f32 %v389_v14 }
 0x2c7   :  { %v574_v15 = vpop.eup %573 }
 0x2c8   :  { %v391_v16 = vsel %vm384_vm3, %v574_v15, 0.0 }
 0x2c9   :  { %392 = vadd.xlane.f32.xlu0 %v391_v16 }
 0x33c   :  { %v393_v17 = vpop.xlane.xlu0 %392 }
 0x33d   :  { %575 = vlog2.f32 %v393_v17 }
 0x343   :  { %v576_v18 = vpop.eup %575 }
 0x344   :  { %v395_v19 = vmul.f32 0.6931472, %v576_v18 }
 0x346   :  { %v396_v20 = vsub.f32 %v388_v13, %v395_v19 }
 0x348   :  { %v399_v21 = vsel %vm384_vm3, %v396_v20, %v398_v9 }
 0x349   :  { %400 = vst [vmem:[#allocation2] sm:$0xff] %v399_v21 }
 0x34a   :  { %411 = dma.vmem_to_hbm [thread:$0]  %s407_s3, 128, %s409_s11, [#allocation3]  }
 0x34b   :  { %601 = dma.done.wait [#allocation3], 128  }
 0x34c   :  { %602 = vsyncadd [#allocation3], 4294967168 }
 0x34d   :  { %416 = vsyncpa [#allocation3], 1 }

</bundles_post_ra>
